<compile_context>
chip_gen: v7x
topology: tpu7x:2x2x1
jax: 0.10.0
libtpu: 0.0.40
codegen_flags: <defaults>
</compile_context>

<pallas_src>
import jax
import jax.numpy as jnp
from jax.experimental import pallas as pl
from jax.experimental.pallas import tpu as pltpu

_EPS = 1e-12                          # F.normalize default eps
_TARGET_TILE_BYTES = 2 * 1024 * 1024  # ~2 MiB/tile; 2 bufs x (in+out) ~ 8 MiB VMEM


def _l2_rows_kernel(x_ref, o_ref):
    # x_ref/o_ref: (tile_rows, D) VMEM tiles; reduce over the last (lane) axis.
    x = x_ref[...].astype(jnp.float32)
    ss = jnp.sum(x * x, axis=-1, keepdims=True)               # (tile_rows, 1)
    # rsqrt(max(ss, eps^2)) == 1 / max(sqrt(ss), eps)  (clamp_min, like F.normalize)
    scale = jax.lax.rsqrt(jnp.maximum(ss, _EPS * _EPS))
    o_ref[...] = (x * scale).astype(o_ref.dtype)


def _l2_channels_kernel(x_ref, o_ref):
    # x_ref/o_ref: (tile_n, C, tile_hw) VMEM tiles; reduce over C (sublane axis),
    # keep H*W on the lane axis so stores stay lane-dense even for tiny C.
    x = x_ref[...].astype(jnp.float32)
    ss = jnp.sum(x * x, axis=1, keepdims=True)                 # (tile_n, 1, tile_hw)
    scale = jax.lax.rsqrt(jnp.maximum(ss, _EPS * _EPS))
    o_ref[...] = (x * scale).astype(o_ref.dtype)


def _pick_tile(extent, unit, bytes_per_slice, budget_bytes=_TARGET_TILE_BYTES):
    """Choose a tile size along one hardware-granular axis.

    `unit` is the granularity (8 sublanes / 128 lanes).  The tile is either a
    multiple of `unit` sized so one tile is ~budget_bytes, or the full extent
    (full-extent blocks are always legal regardless of the (8,128) rule).
    """
    budget = max(unit, (budget_bytes // max(bytes_per_slice, 1)) // unit * unit)
    if extent % unit == 0:
        return min(budget, extent)
    if extent <= budget:
        return extent      # full-extent block, any size allowed
    return budget          # multiple of `unit`; Pallas masks the ragged last block


def _normalize_2d(x):
    """L2-normalize each row of a 2-D array (features lane-dense)."""
    n, d = x.shape
    tile_rows = _pick_tile(n, 8, d * x.dtype.itemsize)
    grid = (pl.cdiv(n, tile_rows),)
    return pl.pallas_call(
        _l2_rows_kernel,
        out_shape=jax.ShapeDtypeStruct((n, d), x.dtype),
        grid=grid,
        in_specs=[pl.BlockSpec((tile_rows, d), lambda i: (i, 0))],
        out_specs=pl.BlockSpec((tile_rows, d), lambda i: (i, 0)),
        compiler_params=pltpu.CompilerParams(
            dimension_semantics=("parallel",)),
    )(x)


def _normalize_channels(x3):
    """L2-normalize over the C axis of an (N, C, HW) array, lane-dense on HW."""
    n, c, hw = x3.shape
    itemsize = x3.dtype.itemsize
    # Lane tile over H*W first, then batch as many N slices as fit the budget.
    tile_hw = _pick_tile(hw, 128, c * itemsize)
    slice_bytes = c * tile_hw * itemsize
    tile_n = int(max(1, min(n, _TARGET_TILE_BYTES // max(slice_bytes, 1))))
    grid = (pl.cdiv(n, tile_n), pl.cdiv(hw, tile_hw))
    return pl.pallas_call(
        _l2_channels_kernel,
        out_shape=jax.ShapeDtypeStruct((n, c, hw), x3.dtype),
        grid=grid,
        in_specs=[pl.BlockSpec((tile_n, c, tile_hw), lambda i, j: (i, 0, j))],
        out_specs=pl.BlockSpec((tile_n, c, tile_hw), lambda i, j: (i, 0, j)),
        compiler_params=pltpu.CompilerParams(
            dimension_semantics=("parallel", "parallel")),
    )(x3)


def normalize(x, p=2):
    """JAX/Pallas equivalent of `Normalize(p=2)(x)` == F.normalize(x, p=2, dim=1)."""
    assert p == 2, "only p=2 (L2) is implemented, matching the module default"
    if x.ndim == 2:
        return _normalize_2d(x)
    if x.ndim >= 3:
        # NCHW (or NC...): stay in the native layout — reshape to (N, C, prod(rest))
        # is a free view, no HBM transpose round-trip.
        shape = x.shape
        x3 = x.reshape(shape[0], shape[1], -1)
        return _normalize_channels(x3).reshape(shape)
    raise ValueError(f"unsupported rank {x.ndim}; F.normalize(dim=1) needs >= 2-D")


def _reference(x):
    # Pure-JAX reference of F.normalize(x, p=2, dim=1).
    norm = jnp.sqrt(jnp.sum(x.astype(jnp.float32) ** 2, axis=1, keepdims=True))
    return (x / jnp.maximum(norm, _EPS)).astype(x.dtype)


if __name__ == "__main__":
    key = jax.random.PRNGKey(0)
    k1, k2 = jax.random.split(key)

    # 2-D case: typical projection-head output (batch=8, features=32).
    x2d = jax.random.normal(k1, (8, 32), dtype=jnp.float32)
    y2d = jax.block_until_ready(normalize(x2d))
    assert y2d.shape == x2d.shape
    assert jnp.allclose(y2d, _reference(x2d), atol=1e-5, rtol=1e-5)

    # 4-D NCHW case: batch=2, channels=4, spatial=16x16 (normalize over C).
    x4d = jax.random.normal(k2, (2, 4, 16, 16), dtype=jnp.float32)
    y4d = jax.block_until_ready(normalize(x4d))
    assert y4d.shape == x4d.shape
    assert jnp.allclose(y4d, _reference(x4d), atol=1e-5, rtol=1e-5)

    print("KERNEL_OK")
</pallas_src>

<mosaic_0001>
module attributes {stable_mosaic.version = 11 : i64} {
  func.func @_l2_rows_kernel(%arg0: i32, %arg1: memref<8x32xf32, #tpu.memory_space<vmem>>, %arg2: memref<8x32xf32, #tpu.memory_space<vmem>>) attributes {dimension_semantics = [#tpu.dimension_semantics<parallel>], iteration_bounds = array<i64: 1>, scalar_prefetch = 0 : i64, scratch_operands = 0 : i64, tpu.core_type = #tpu.core_type<tc>, window_params = [{transform_indices = @transform_0, window_bounds = array<i64: 8, 32>}, {transform_indices = @transform_1, window_bounds = array<i64: 8, 32>}]} {
    %c0 = arith.constant 0 : index
    %c0_0 = arith.constant 0 : index
    %0 = vector.load %arg1[%c0, %c0_0] : memref<8x32xf32, #tpu.memory_space<vmem>>, vector<8x32xf32>
    %1 = arith.mulf %0, %0 : vector<8x32xf32>
    %cst = arith.constant dense<0.000000e+00> : vector<8xf32>
    %2 = vector.multi_reduction <add>, %1, %cst [1] : vector<8x32xf32> to vector<8xf32>
    %3 = vector.shape_cast %2 : vector<8xf32> to vector<8x1xf32>
    %cst_1 = arith.constant 1.000000e-24 : f32
    %4 = vector.broadcast %cst_1 : f32 to vector<8x1xf32>
    %5 = arith.maximumf %3, %4 : vector<8x1xf32>
    %6 = math.rsqrt %5 : vector<8x1xf32>
    %7 = vector.broadcast %6 : vector<8x1xf32> to vector<8x32xf32>
    %8 = arith.mulf %0, %7 : vector<8x32xf32>
    %c0_2 = arith.constant 0 : index
    %c0_3 = arith.constant 0 : index
    %9 = vector.load %arg2[%c0_2, %c0_3] : memref<8x32xf32, #tpu.memory_space<vmem>>, vector<8x32xf32>
    tpu.vector_store %arg2[%c0_2, %c0_3], %8 {strides = array<i32>} : memref<8x32xf32, #tpu.memory_space<vmem>>, vector<8x32xf32>,
    return
  }
  func.func @transform_0(%arg0: i32) -> (i32, i32) {
    %c0_i32 = arith.constant 0 : i32
    %c0_i32_0 = arith.constant 0 : i32
    return %arg0, %c0_i32 : i32, i32
  }
  func.func @transform_1(%arg0: i32) -> (i32, i32) {
    %c0_i32 = arith.constant 0 : i32
    %c0_i32_0 = arith.constant 0 : i32
    return %arg0, %c0_i32 : i32, i32
  }
}

</mosaic_0001>

<bundles_post_ra>
// kernel: tpu_custom_call.1
= control target key start
LH: loop header
LB: loop body
LE: loop exit
PB: predicated region body
PF: predicated region fallthrough
CT: control target
= control target key end

     0   :  { %6 = vsyncpa [#allocation3], 0  ;;  %s134_s0 = inlined_call_operand.hbm [shape: f32[8,32], index: 0, kind: input, shape index: {}]   ;;  %s135_s1 = inlined_call_operand.hbm [shape: f32[8,32], index: 1, kind: output, shape index: {}]  }
   0x1   :  { %7 = vsyncpa [#allocation4], 0  ;;  %s98_s6 = smov [#allocation2]   ;;  %s50_s10 = scalar_lea.hbm %s134_s0, 128 }
   0x2   :  { %s14_s7 = sshll.u32 %s98_s6, 4  ;;  %p51_p0 = scmp.ne.s32.totalorder %s134_s0, %s50_s10  ;;  %s15_s7 = int_to_ptr.vmem [resolvable:$true] %s14_s7 }
   0x3   :  { %p54_p1 = scmp.lt.u32.totalorder %s50_s10, %s134_s0 }
   0x5   :  { %p56_p2 = pnand %p54_p1, %p51_p0 }
   0x7   :  { %59 = shalt.err (!%p56_p2)
}
   0x8   :  { %s60_s15 = scalar_lea.vmem %s15_s7, 128  ;;  %p65_p4 = scmp.lt.s32.totalorder %s15_s7, %s15_s7 }
   0x9   :  { %p61_p3 = scmp.ne.s32.totalorder %s15_s7, %s60_s15  ;;  %p66_p5 = scmp.lt.s32.totalorder %s60_s15, %s60_s15 }
   0xb   :  { %p67_p6 = por %p66_p5, %p65_p4 }
   0xd   :  { %p68_p7 = pnand %p67_p6, %p61_p3 }
   0xf   :  { %71 = shalt.err (!%p68_p7)
}
  0x10   :  { %17 = dma.hbm_to_vmem [thread:$0]  %s134_s0, 128, %s15_s7, [#allocation3]  }
  0x11   :  { %94 = dma.done.wait [#allocation3], 128  }
  0x12   :  { %95 = vsyncadd [#allocation3], 4294967168  ;;  %v21_v0 = vld [vmem:[#allocation2] sm:$0xff]  ;;  %vm23_vm0 = vcmask 261120   ;;  %s99_s18 = smov [#allocation5]  }
  0x13   :  { %v22_v1 = vmul.f32 %v21_v0, %v21_v0  ;;  %s37_s19 = sshll.u32 %s99_s18, 4  ;;  %s38_s19 = int_to_ptr.vmem [resolvable:$true] %s37_s19 }
  0x14   :  { %s72_s20 = scalar_lea.vmem %s38_s19, 128  ;;  %p77_p9 = scmp.lt.s32.totalorder %s38_s19, %s38_s19 }
  0x15   :  { %v24_v2 = vsel %vm23_vm0, %v22_v1, 0.0  ;;  %p73_p8 = scmp.ne.s32.totalorder %s38_s19, %s72_s20  ;;  %p78_p10 = scmp.lt.s32.totalorder %s72_s20, %s72_s20 }
  0x16   :  { %25 = vadd.xlane.f32.xlu0 %v24_v2 }
  0x17   :  { %p79_p11 = por %p78_p10, %p77_p9 }
  0x19   :  { %p80_p12 = pnand %p79_p11, %p73_p8 }
  0xa3   :  { %v26_v3 = vpop.xlane.xlu0 %25 }
  0xa4   :  { %v27_v4 = vmax.f32 %v26_v3, 1e-24 }
  0xa6   :  { %48 = vrsqrt.f32 %v27_v4 }
  0xb0   :  { %v49_v5 = vpop.eup %48 }
  0xb1   :  { %v29_v6 = vmul.f32 %v49_v5, %v21_v0 }
  0xb3   :  { %30 = vst.msk [vmem:[#allocation5] sm:$0xff] %vm23_vm0, %v29_v6 }
  0xb4   :  { %83 = shalt.err (!%p80_p12)
}
  0xb5   :  { %s84_s22 = scalar_lea.hbm %s135_s1, 128 }
  0xb6   :  { %p85_p13 = scmp.ne.s32.totalorder %s135_s1, %s84_s22  ;;  %p88_p0 = scmp.lt.u32.totalorder %s84_s22, %s135_s1 }
  0xb8   :  { %p90_p1 = pnand %p88_p0, %p85_p13 }
  0xba   :  { %93 = shalt.err (!%p90_p1)
}
  0xbb   :  { %40 = dma.vmem_to_hbm [thread:$0]  %s38_s19, 128, %s135_s1, [#allocation4]  }
  0xbc   :  { %96 = dma.done.wait [#allocation4], 128  }
  0xbd   :  { %97 = vsyncadd [#allocation4], 4294967168 }
  0xbe   :  { %44 = vsyncpa [#allocation3], 1 }
  0xbf   :  { %45 = vsyncpa [#allocation4], 1 }

</bundles_post_ra>
